<compile_context>
chip_gen: v6e
topology: v6e:2x2x1
jax: 0.10.0
libtpu: 0.0.40
codegen_flags: <defaults>
</compile_context>

<pallas_src>
import jax
import jax.numpy as jnp
from jax.experimental import pallas as pl
from jax.experimental.pallas import tpu as pltpu

_LANE = 128
_SUBLANE_BF16 = 16


def _round_up(n, m):
    return ((n + m - 1) // m) * m


def _mlp_kernel(x_ref, w1_ref, b1_ref, w2_ref, b2_ref, w3_ref, b3_ref, o_ref):
    # x arrives as f32 straight from HBM; cast to bf16 on the VPU right before the
    # MXU matmul (free under the DMA/overhead bottleneck).
    x = x_ref[...].astype(jnp.bfloat16)

    # hidden1: bf16 MXU matmul, f32 accumulate, bias + tanh in f32 (EUP slot).
    z = jnp.tanh(
        jnp.dot(x, w1_ref[...], preferred_element_type=jnp.float32) + b1_ref[...]
    ).astype(jnp.bfloat16)

    # hidden2
    y = jnp.tanh(
        jnp.dot(z, w2_ref[...], preferred_element_type=jnp.float32) + b2_ref[...]
    ).astype(jnp.bfloat16)

    # predict (no activation) -- written at the true (unpadded) output width.
    out = jnp.dot(y, w3_ref[...], preferred_element_type=jnp.float32) + b3_ref[...]
    o_ref[...] = out.astype(o_ref.dtype)


def prepare_params(params):
    """Pad hidden dims to 128 lanes and cast weights to bf16.  Call ONCE (hoisted
    out of the per-forward path per the perf review)."""
    w1, b1, w2, b2, w3, b3 = params
    in_f, hs1 = w1.shape
    hs2 = w2.shape[1]
    out_f = w3.shape[1]
    hs1_p = _round_up(hs1, _LANE)
    hs2_p = _round_up(hs2, _LANE)

    bf16 = jnp.bfloat16
    # Zero padding is exact: padded hidden lanes get tanh(0 + 0) = 0 and padded
    # w2/w3 rows are zero, so padding never perturbs the real outputs.
    w1p = jnp.zeros((in_f, hs1_p), bf16).at[:, :hs1].set(w1.astype(bf16))
    b1p = jnp.zeros((1, hs1_p), jnp.float32).at[:, :hs1].set(b1.reshape(1, hs1))
    w2p = jnp.zeros((hs1_p, hs2_p), bf16).at[:hs1, :hs2].set(w2.astype(bf16))
    b2p = jnp.zeros((1, hs2_p), jnp.float32).at[:, :hs2].set(b2.reshape(1, hs2))
    # Output feature dim stays UNPADDED (full-extent last dim in the BlockSpec).
    w3p = jnp.zeros((hs2_p, out_f), bf16).at[:hs2, :].set(w3.astype(bf16))
    b3p = b3.reshape(1, out_f).astype(jnp.float32)
    return (w1p, b1p, w2p, b2p, w3p, b3p)


def _choose_batch_tiling(B, tile_b_max):
    """Balanced batch tiles: <= 16 rows of padding per tile, rounded to the bf16
    sublane pack (16), and >= 2 grid steps when there is enough work so the
    'parallel' batch axis shards across both TensorCores on v7x."""
    grid_n = pl.cdiv(B, tile_b_max)
    if grid_n == 1 and B >= 2 * _SUBLANE_BF16:
        grid_n = 2
    tile_b = _round_up(pl.cdiv(B, grid_n), _SUBLANE_BF16)
    B_p = grid_n * tile_b
    return tile_b, B_p, grid_n


def net_forward(x, padded_params, *, tile_b_max=1024):
    """Fused 3-layer MLP forward.

    x: (B, input_size) float32.
    padded_params: output of prepare_params().
    Returns (B, output_size) float32.
    """
    w1p, b1p, w2p, b2p, w3p, b3p = padded_params
    B, in_f = x.shape
    hs1_p = w1p.shape[1]
    hs2_p = w2p.shape[1]
    out_f = w3p.shape[1]

    tile_b, B_p, grid_n = _choose_batch_tiling(B, tile_b_max)

    # Only the batch dim is padded; x stays f32 (cast to bf16 inside the kernel).
    xp = x if B_p == B else jnp.zeros((B_p, in_f), x.dtype).at[:B].set(x)

    # x / out tiles walk the batch; weights & biases map to block (0, 0) every step
    # so they are fetched once and stay resident in VMEM across all grid steps.
    in_specs = [
        pl.BlockSpec((tile_b, in_f), lambda i: (i, 0)),   # x (f32, in_f unpadded)
        pl.BlockSpec((in_f, hs1_p), lambda i: (0, 0)),    # w1 (resident)
        pl.BlockSpec((1, hs1_p), lambda i: (0, 0)),       # b1 (resident)
        pl.BlockSpec((hs1_p, hs2_p), lambda i: (0, 0)),   # w2 (resident)
        pl.BlockSpec((1, hs2_p), lambda i: (0, 0)),       # b2 (resident)
        pl.BlockSpec((hs2_p, out_f), lambda i: (0, 0)),   # w3 (resident)
        pl.BlockSpec((1, out_f), lambda i: (0, 0)),       # b3 (resident)
    ]
    out_specs = pl.BlockSpec((tile_b, out_f), lambda i: (i, 0))

    # Explicit scoped-VMEM accounting: double-buffered x/out tiles + resident
    # weights (conservatively counted double-buffered) + activation slack + 20%.
    tile_bytes = 2 * tile_b * (in_f + out_f) * 4
    weight_bytes = 2 * (
        (in_f * hs1_p + hs1_p * hs2_p + hs2_p * out_f) * 2   # bf16 weights
        + (hs1_p + hs2_p + out_f) * 4                         # f32 biases
    )
    act_bytes = 4 * tile_b * max(hs1_p, hs2_p) * 4            # intermediates / spill slack
    vmem_limit = int(1.2 * (tile_bytes + weight_bytes + act_bytes)) + (1 << 20)
    vmem_limit = min(max(vmem_limit, 8 * 1024 * 1024), 128 * 1024 * 1024)

    out = pl.pallas_call(
        _mlp_kernel,
        out_shape=jax.ShapeDtypeStruct((B_p, out_f), jnp.float32),
        grid_spec=pltpu.PrefetchScalarGridSpec(
            num_scalar_prefetch=0,
            grid=(grid_n,),
            in_specs=in_specs,
            out_specs=out_specs,
        ),
        compiler_params=pltpu.CompilerParams(
            # Batch axis is embarrassingly parallel -> shards across both TCs on
            # v7x (grid_n >= 2 whenever B >= 32); harmless on 1-TC v5e/v6e.
            dimension_semantics=("parallel",),
            vmem_limit_bytes=vmem_limit,
        ),
    )(xp, w1p, b1p, w2p, b2p, w3p, b3p)

    return out if B_p == B else out[:B]


def _xavier_uniform(key, fan_in, fan_out):
    # Matches torch.nn.init.xavier_uniform_ semantics (gain=1).
    limit = jnp.sqrt(6.0 / (fan_in + fan_out))
    return jax.random.uniform(
        key, (fan_in, fan_out), dtype=jnp.float32, minval=-limit, maxval=limit
    )


def init_params(key, input_size, hs1, hs2, output_size):
    k1, k2, k3 = jax.random.split(key, 3)
    w1 = _xavier_uniform(k1, input_size, hs1)
    b1 = jnp.zeros((1, hs1), jnp.float32)
    w2 = _xavier_uniform(k2, hs1, hs2)
    b2 = jnp.zeros((1, hs2), jnp.float32)
    w3 = _xavier_uniform(k3, hs2, output_size)
    b3 = jnp.zeros((1, output_size), jnp.float32)
    return (w1, b1, w2, b2, w3, b3)


def _reference_bf16(x, params):
    # Same bf16-compute / f32-accumulate recipe as the kernel, in pure JAX.
    w1, b1, w2, b2, w3, b3 = params
    bf16 = jnp.bfloat16
    r = jnp.tanh(
        jnp.dot(x.astype(bf16), w1.astype(bf16), preferred_element_type=jnp.float32) + b1
    )
    r = jnp.tanh(
        jnp.dot(r.astype(bf16), w2.astype(bf16), preferred_element_type=jnp.float32) + b2
    )
    return jnp.dot(r.astype(bf16), w3.astype(bf16), preferred_element_type=jnp.float32) + b3


def _reference_f32(x, params):
    w1, b1, w2, b2, w3, b3 = params
    r = jnp.tanh(x @ w1 + b1)
    r = jnp.tanh(r @ w2 + b2)
    return r @ w3 + b3


if __name__ == "__main__":
    # Small shapes consistent with the module's __init__ kwargs.
    input_size, hs1, hs2, output_size = 16, 32, 32, 8

    key = jax.random.PRNGKey(0)
    k_x, k_p = jax.random.split(key)
    params = init_params(k_p, input_size, hs1, hs2, output_size)

    # Pad/cast parameters ONCE (hoisted out of the per-forward path).
    padded = prepare_params(params)

    # Case 1: batch=64 -> balanced 2-step grid (tile_b=32), no batch padding.
    x = jax.random.normal(k_x, (64, input_size), dtype=jnp.float32)
    out = jax.block_until_ready(net_forward(x, padded))
    assert out.shape == (64, output_size)
    assert jnp.allclose(out, _reference_bf16(x, params), atol=5e-3, rtol=1e-3), \
        "mismatch vs bf16 JAX reference (batch=64)"
    assert jnp.allclose(out, _reference_f32(x, params), atol=1e-1), \
        "mismatch vs f32 JAX reference (batch=64)"

    # Case 2: ragged batch=50 -> exercises batch padding + final slice.
    x2 = jax.random.normal(jax.random.PRNGKey(1), (50, input_size), dtype=jnp.float32)
    out2 = jax.block_until_ready(net_forward(x2, padded))
    assert out2.shape == (50, output_size)
    assert jnp.allclose(out2, _reference_bf16(x2, params), atol=5e-3, rtol=1e-3), \
        "mismatch vs bf16 JAX reference (batch=50)"
    assert jnp.allclose(out2, _reference_f32(x2, params), atol=1e-1), \
        "mismatch vs f32 JAX reference (batch=50)"

    print("KERNEL_OK")
</pallas_src>

<mosaic_0001>
module attributes {stable_mosaic.version = 11 : i64} {
  func.func @_mlp_kernel(%arg0: i32, %arg1: memref<32x16xf32, #tpu.memory_space<vmem>>, %arg2: memref<16x128xbf16, #tpu.memory_space<vmem>>, %arg3: memref<1x128xf32, #tpu.memory_space<vmem>>, %arg4: memref<128x128xbf16, #tpu.memory_space<vmem>>, %arg5: memref<1x128xf32, #tpu.memory_space<vmem>>, %arg6: memref<128x8xbf16, #tpu.memory_space<vmem>>, %arg7: memref<1x8xf32, #tpu.memory_space<vmem>>, %arg8: memref<32x8xf32, #tpu.memory_space<vmem>>) attributes {dimension_semantics = [#tpu.dimension_semantics<parallel>], iteration_bounds = array<i64: 2>, scalar_prefetch = 0 : i64, scratch_operands = 0 : i64, tpu.core_type = #tpu.core_type<tc>, window_params = [{transform_indices = @transform_0, window_bounds = array<i64: 32, 16>}, {pipeline_mode = #tpu.pipeline_mode<synchronous>, transform_indices = @transform_1, window_bounds = array<i64: 16, 128>}, {pipeline_mode = #tpu.pipeline_mode<synchronous>, transform_indices = @transform_2, window_bounds = array<i64: 1, 128>}, {pipeline_mode = #tpu.pipeline_mode<synchronous>, transform_indices = @transform_3, window_bounds = array<i64: 128, 128>}, {pipeline_mode = #tpu.pipeline_mode<synchronous>, transform_indices = @transform_4, window_bounds = array<i64: 1, 128>}, {pipeline_mode = #tpu.pipeline_mode<synchronous>, transform_indices = @transform_5, window_bounds = array<i64: 128, 8>}, {pipeline_mode = #tpu.pipeline_mode<synchronous>, transform_indices = @transform_6, window_bounds = array<i64: 1, 8>}, {transform_indices = @transform_7, window_bounds = array<i64: 32, 8>}]} {
    %c0 = arith.constant 0 : index
    %c0_0 = arith.constant 0 : index
    %0 = vector.load %arg1[%c0, %c0_0] : memref<32x16xf32, #tpu.memory_space<vmem>>, vector<32x16xf32>
    %1 = arith.truncf %0 : vector<32x16xf32> to vector<32x16xbf16>
    %c0_1 = arith.constant 0 : index
    %c0_2 = arith.constant 0 : index
    %2 = vector.load %arg2[%c0_1, %c0_2] : memref<16x128xbf16, #tpu.memory_space<vmem>>, vector<16x128xbf16>
    %cst = arith.constant dense<0.000000e+00> : vector<32x128xf32>
    %3 = tpu.matmul %1, %2, %cst {dimension_numbers = #tpu.dot_dimension_numbers<[1], [0], [0], [1], [0, 0, 1, 1], [], []>} : vector<32x16xbf16>, vector<16x128xbf16>, vector<32x128xf32> -> vector<32x128xf32>
    %c0_3 = arith.constant 0 : index
    %c0_4 = arith.constant 0 : index
    %4 = vector.load %arg3[%c0_3, %c0_4] : memref<1x128xf32, #tpu.memory_space<vmem>>, vector<1x128xf32>
    %5 = vector.broadcast %4 : vector<1x128xf32> to vector<32x128xf32>
    %6 = arith.addf %3, %5 : vector<32x128xf32>
    %7 = math.tanh %6 : vector<32x128xf32>
    %8 = arith.truncf %7 : vector<32x128xf32> to vector<32x128xbf16>
    %c0_5 = arith.constant 0 : index
    %c0_6 = arith.constant 0 : index
    %9 = vector.load %arg4[%c0_5, %c0_6] : memref<128x128xbf16, #tpu.memory_space<vmem>>, vector<128x128xbf16>
    %cst_7 = arith.constant dense<0.000000e+00> : vector<32x128xf32>
    %10 = tpu.matmul %8, %9, %cst_7 {dimension_numbers = #tpu.dot_dimension_numbers<[1], [0], [0], [1], [0, 0, 1, 1], [], []>} : vector<32x128xbf16>, vector<128x128xbf16>, vector<32x128xf32> -> vector<32x128xf32>
    %c0_8 = arith.constant 0 : index
    %c0_9 = arith.constant 0 : index
    %11 = vector.load %arg5[%c0_8, %c0_9] : memref<1x128xf32, #tpu.memory_space<vmem>>, vector<1x128xf32>
    %12 = vector.broadcast %11 : vector<1x128xf32> to vector<32x128xf32>
    %13 = arith.addf %10, %12 : vector<32x128xf32>
    %14 = math.tanh %13 : vector<32x128xf32>
    %15 = arith.truncf %14 : vector<32x128xf32> to vector<32x128xbf16>
    %c0_10 = arith.constant 0 : index
    %c0_11 = arith.constant 0 : index
    %16 = vector.load %arg6[%c0_10, %c0_11] : memref<128x8xbf16, #tpu.memory_space<vmem>>, vector<128x8xbf16>
    %cst_12 = arith.constant dense<0.000000e+00> : vector<32x8xf32>
    %17 = tpu.matmul %15, %16, %cst_12 {dimension_numbers = #tpu.dot_dimension_numbers<[1], [0], [0], [1], [0, 0, 1, 1], [], []>} : vector<32x128xbf16>, vector<128x8xbf16>, vector<32x8xf32> -> vector<32x8xf32>
    %c0_13 = arith.constant 0 : index
    %c0_14 = arith.constant 0 : index
    %18 = vector.load %arg7[%c0_13, %c0_14] : memref<1x8xf32, #tpu.memory_space<vmem>>, vector<1x8xf32>
    %19 = vector.broadcast %18 : vector<1x8xf32> to vector<32x8xf32>
    %20 = arith.addf %17, %19 : vector<32x8xf32>
    %c0_15 = arith.constant 0 : index
    %c0_16 = arith.constant 0 : index
    %21 = vector.load %arg8[%c0_15, %c0_16] : memref<32x8xf32, #tpu.memory_space<vmem>>, vector<32x8xf32>
    tpu.vector_store %arg8[%c0_15, %c0_16], %20 {strides = array<i32>} : memref<32x8xf32, #tpu.memory_space<vmem>>, vector<32x8xf32>,
    return
  }
  func.func @transform_0(%arg0: i32) -> (i32, i32) {
    %c0_i32 = arith.constant 0 : i32
    %c0_i32_0 = arith.constant 0 : i32
    return %arg0, %c0_i32 : i32, i32
  }
  func.func @transform_1(%arg0: i32) -> (i32, i32) {
    %c0_i32 = arith.constant 0 : i32
    %c0_i32_0 = arith.constant 0 : i32
    %c0_i32_1 = arith.constant 0 : i32
    return %c0_i32, %c0_i32_0 : i32, i32
  }
  func.func @transform_2(%arg0: i32) -> (i32, i32) {
    %c0_i32 = arith.constant 0 : i32
    %c0_i32_0 = arith.constant 0 : i32
    %c0_i32_1 = arith.constant 0 : i32
    return %c0_i32, %c0_i32_0 : i32, i32
  }
  func.func @transform_3(%arg0: i32) -> (i32, i32) {
    %c0_i32 = arith.constant 0 : i32
    %c0_i32_0 = arith.constant 0 : i32
    %c0_i32_1 = arith.constant 0 : i32
    return %c0_i32, %c0_i32_0 : i32, i32
  }
  func.func @transform_4(%arg0: i32) -> (i32, i32) {
    %c0_i32 = arith.constant 0 : i32
    %c0_i32_0 = arith.constant 0 : i32
    %c0_i32_1 = arith.constant 0 : i32
    return %c0_i32, %c0_i32_0 : i32, i32
  }
  func.func @transform_5(%arg0: i32) -> (i32, i32) {
    %c0_i32 = arith.constant 0 : i32
    %c0_i32_0 = arith.constant 0 : i32
    %c0_i32_1 = arith.constant 0 : i32
    return %c0_i32, %c0_i32_0 : i32, i32
  }
  func.func @transform_6(%arg0: i32) -> (i32, i32) {
    %c0_i32 = arith.constant 0 : i32
    %c0_i32_0 = arith.constant 0 : i32
    %c0_i32_1 = arith.constant 0 : i32
    return %c0_i32, %c0_i32_0 : i32, i32
  }
  func.func @transform_7(%arg0: i32) -> (i32, i32) {
    %c0_i32 = arith.constant 0 : i32
    %c0_i32_0 = arith.constant 0 : i32
    return %arg0, %c0_i32 : i32, i32
  }
}

</mosaic_0001>

<bundles_post_ra>
// kernel: tpu_custom_call.1
= control target key start
LH: loop header
LB: loop body
LE: loop exit
PB: predicated region body
PF: predicated region fallthrough
CT: control target
= control target key end

     0   :  { %s864_s24 = smov 0   ;;  %s948_s0 = inlined_call_operand.vmem [shape: f32[64,16], index: 0, kind: input, shape index: {}]   ;;  %s949_s1 = inlined_call_operand.vmem [shape: bf16[16,128], index: 1, kind: input, shape index: {}]   ;;  %s950_s2 = inlined_call_operand.vmem [shape: f32[1,128], index: 2, kind: input, shape index: {}]   ;;  %s951_s3 = inlined_call_operand.vmem [shape: bf16[128,128], index: 3, kind: input, shape index: {}]   ;;  %s952_s4 = inlined_call_operand.vmem [shape: f32[1,128], index: 4, kind: input, shape index: {}]   ;;  %s953_s5 = inlined_call_operand.vmem [shape: bf16[128,8], index: 5, kind: input, shape index: {}]   ;;  %s954_s6 = inlined_call_operand.vmem [shape: f32[1,8], index: 6, kind: input, shape index: {}]   ;;  %s955_s7 = inlined_call_operand.vmem [shape: f32[64,8], index: 7, kind: output, shape index: {}]  }
   0x1 LB: > { %s673_s25 = sadd.s32 4294967295, %s822_s24   ;;  %p677_p0 = scmp.ge.s32.totalorder %s822_s24, 1  ;;  %s822_s24 = sphi %s864_s24, %s17_s24  }
   0x2   : > { %p238_p1 = scmp.lt.s32.totalorder %s822_s24, 3 }
   0x4   : > { %p239_p2 = pnand %p677_p0, %p238_p1 }
   0x5   : > { %s678_s28 = sshll.u32 (!%p239_p2), %s673_s25, 2 }
   0x6   : > { %242 = sbr.rel (%p239_p2) target bundleno = 656 (0x290), region = 48  ;;  %p271_p3 = scmp.lt.s32.totalorder (!%p239_p2), %s678_s28, 7 }
   0xb   : > { %v783_v0 = vld [vmem:[%s949_s1] sm:$0xff]   ;;  %v784_v1 = vld [vmem:[%s951_s3 + $0x38] sm:$0xff]   ;;  %s957_s28 = smov (!%p271_p3, %s678_s28), 7  ;;  %v785_v2 = vld [vmem:[%s951_s3 + $0x30] sm:$0xff]   ;;  %vm304_vm0 = vcmask 130048   ;;  %vm612_vm1 = vcmask 64512  }
   0xc   : > { %729 = vmatprep.subr.bf16.mxu0 %v783_v0  ;;  %735 = vmatprep.subr.bf16.mxu1 %v784_v1  ;;  %s679_s10 = sshll.u32 %s957_s28, 3  ;;  %v786_v9 = vld [vmem:[%s951_s3 + $0x28] sm:$0xff]   ;;  %v787_v10 = vld [vmem:[%s951_s3 + $0x20] sm:$0xff]   ;;  %v788_v11 = vld [vmem:[%s951_s3 + $0x18] sm:$0xff]  }
   0xd   : > { %730 = vmatpush3.bf16.msra.mxu0 %v783_v0  ;;  %736 = vmatpush3.bf16.msra.mxu1 %v784_v1  ;;  %s274_s13 = scalar_lea.vmem %s948_s0, %s679_s10  ;;  %v789_v12 = vld [vmem:[%s951_s3 + $0x10] sm:$0xff]   ;;  %v790_v13 = vld [vmem:[%s951_s3 + $0x8] sm:$0xff]   ;;  %v791_v14 = vld [vmem:[%s951_s3] sm:$0xff]   ;;  %s280_s30 = scalar_lea.vmem %s955_s7, %s679_s10 }
   0xe   : > { %737 = vmatprep.subr.bf16.mxu1 %v785_v2  ;;  %v283_v3 = vld [vmem:[%s274_s13] sm:$0xff]  ;;  %v284_v4 = vld [vmem:[%s274_s13 + $0x8] sm:$0xff]  ;;  %v285_v5 = vld [vmem:[%s274_s13 + $0x10] sm:$0xff] }
   0xf   : > { %v287_v6 = vpack.c.bf16 %v284_v4, %v283_v3  ;;  %v286_v7 = vld [vmem:[%s274_s13 + $0x18] sm:$0xff]  ;;  %v793_v16 = vld [vmem:[%s953_s5 + $0x30] sm:$0xff]   ;;  %v682_v18 = vld [vmem:[%s950_s2] ss:$0 sm:$0xff] }
  0x10   : > { %v288_v8 = vpack.c.bf16 %v286_v7, %v285_v5  ;;  %v792_v15 = vld [vmem:[%s953_s5 + $0x38] sm:$0xff]   ;;  %v794_v32 = vld [vmem:[%s953_s5 + $0x28] sm:$0xff]   ;;  %v795_v33 = vld [vmem:[%s953_s5 + $0x20] sm:$0xff]  }
  0x11   : > { %738 = vmatpush3.bf16.msra.mxu1 %v785_v2  ;;  %731 = vmatprep.mubr.msk.bf16.mxu0 %vm304_vm0, %v287_v6  ;;  %v796_v34 = vld [vmem:[%s953_s5 + $0x18] sm:$0xff]   ;;  %v797_v35 = vld [vmem:[%s953_s5 + $0x10] sm:$0xff]   ;;  %v798_v36 = vld [vmem:[%s953_s5 + $0x8] sm:$0xff]  }
  0x12   : > { %732 = vmatmul.mubr.msk.bf16.vlgmr.msra.gmra.mxu0 %vm304_vm0, %v288_v8  ;;  %739 = vmatprep.subr.bf16.mxu1 %v786_v9  ;;  %v799_v37 = vld [vmem:[%s953_s5] sm:$0xff]  }
  0x13   : > { %755 = vmatprep.subr.bf16.mxu0 %v792_v15  ;;  %v686_v39 = vld [vmem:[%s952_s4] ss:$0 sm:$0xff] }
  0x14   : > { %756 = vmatpush3.bf16.msra.mxu0 %v792_v15  ;;  %v695_v54 = vld [vmem:[%s954_s6] ss:$0 sm:$0xff] }
  0x15   : > { %740 = vmatpush3.bf16.msra.mxu1 %v786_v9  ;;  %757 = vmatprep.subr.bf16.mxu0 %v793_v16 }
  0x16   : > { %741 = vmatprep.subr.bf16.mxu1 %v787_v10 }
  0x18   : > { %758 = vmatpush3.bf16.msra.mxu0 %v793_v16 }
  0x19   : > { %742 = vmatpush3.bf16.msra.mxu1 %v787_v10  ;;  %759 = vmatprep.subr.bf16.mxu0 %v794_v32 }
  0x1a   : > { %743 = vmatprep.subr.bf16.mxu1 %v788_v11 }
  0x1c   : > { %760 = vmatpush3.bf16.msra.mxu0 %v794_v32 }
  0x1d   : > { %744 = vmatpush3.bf16.msra.mxu1 %v788_v11  ;;  %761 = vmatprep.subr.bf16.mxu0 %v795_v33 }
  0x1e   : > { %745 = vmatprep.subr.bf16.mxu1 %v789_v12 }
  0x20   : > { %762 = vmatpush3.bf16.msra.mxu0 %v795_v33 }
  0x21   : > { %746 = vmatpush3.bf16.msra.mxu1 %v789_v12  ;;  %763 = vmatprep.subr.bf16.mxu0 %v796_v34 }
  0x22   : > { %747 = vmatprep.subr.bf16.mxu1 %v790_v13 }
  0x24   : > { %764 = vmatpush3.bf16.msra.mxu0 %v796_v34 }
  0x25   : > { %748 = vmatpush3.bf16.msra.mxu1 %v790_v13  ;;  %765 = vmatprep.subr.bf16.mxu0 %v797_v35 }
  0x26   : > { %749 = vmatprep.subr.bf16.mxu1 %v791_v14 }
  0x28   : > { %766 = vmatpush3.bf16.msra.mxu0 %v797_v35 }
  0x29   : > { %750 = vmatpush3.bf16.msra.mxu1 %v791_v14  ;;  %767 = vmatprep.subr.bf16.mxu0 %v798_v36 }
  0x2c   : > { %768 = vmatpush3.bf16.msra.mxu0 %v798_v36 }
  0x2d   : > { %769 = vmatprep.subr.bf16.mxu0 %v799_v37 }
  0x30   : > { %770 = vmatpush3.bf16.msra.mxu0 %v799_v37 }
  0xd2   : > { %v733_v17 = vpop.f32.mrf.mxu0 }
  0xd3   : > { %v354_v23 = vadd.f32 %v733_v17, %v682_v18 }
  0xd4   : > { %v345_v19 = vpop.f32.mrf.mxu0 }
  0xd5   : > { %v346_v20 = vadd.f32 %v682_v18, %v345_v19 }
  0xd6   : > { %v734_v21 = vpop.f32.mrf.mxu0 }
  0xd7   : > { %v357_v22 = vadd.f32 %v734_v21, %v682_v18  ;;  %800 = vtanh.f32 %v346_v20 }
  0xd8   : > { %v348_v24 = vpop.f32.mrf.mxu0 }
  0xd9   : > { %v349_v25 = vadd.f32 %v682_v18, %v348_v24  ;;  %802 = vtanh.f32 %v357_v22 }
  0xdb   : > { %804 = vtanh.f32 %v349_v25 }
  0xdc   : > { %806 = vtanh.f32 %v354_v23 }
  0xe4   : > { %v801_v26 = vpop.eup %800 }
  0xe6   : > { %v803_v27 = vpop.eup %802 }
  0xe8   : > { %v805_v28 = vpop.eup %804 }
  0xe9   : > { %v807_v29 = vpop.eup %806  ;;  %v364_v30 = vpack.c.bf16 %v805_v28, %v801_v26 }
  0xea   : > { %v365_v31 = vpack.c.bf16 %v803_v27, %v807_v29 }
  0xeb   : > { %751 = vmatprep.mubr.bf16.mxu1 %v364_v30 }
  0xec   : > { %752 = vmatmul.mubr.bf16.vlgmr.msra.gmra.mxu1 %v365_v31 }
 0x1ac   : > { %v753_v38 = vpop.f32.mrf.mxu1 }
 0x1ad   : > { %v480_v44 = vadd.f32 %v753_v38, %v686_v39 }
 0x1ae   : > { %v471_v40 = vpop.f32.mrf.mxu1 }
 0x1af   : > { %v472_v41 = vadd.f32 %v686_v39, %v471_v40 }
 0x1b0   : > { %v754_v42 = vpop.f32.mrf.mxu1 }
 0x1b1   : > { %v483_v43 = vadd.f32 %v754_v42, %v686_v39  ;;  %808 = vtanh.f32 %v472_v41 }
 0x1b2   : > { %v474_v45 = vpop.f32.mrf.mxu1 }
 0x1b3   : > { %v475_v46 = vadd.f32 %v686_v39, %v474_v45  ;;  %810 = vtanh.f32 %v483_v43 }
 0x1b5   : > { %812 = vtanh.f32 %v475_v46 }
 0x1b6   : > { %814 = vtanh.f32 %v480_v44 }
 0x1be   : > { %v809_v47 = vpop.eup %808 }
 0x1c0   : > { %v811_v48 = vpop.eup %810 }
 0x1c2   : > { %v813_v49 = vpop.eup %812 }
 0x1c3   : > { %v815_v50 = vpop.eup %814  ;;  %v490_v51 = vpack.c.bf16 %v813_v49, %v809_v47 }
 0x1c4   : > { %v491_v52 = vpack.c.bf16 %v811_v48, %v815_v50 }
 0x1c5   : > { %771 = vmatprep.mubr.bf16.mxu0 %v490_v51 }
 0x1c6   : > { %772 = vmatmul.mubr.bf16.vlgmr.msra.gmra.mxu0 %v491_v52 }
 0x286   : > { %v773_v53 = vpop.f32.mrf.mxu0 }
 0x287   : > { %v606_v60 = vadd.f32 %v773_v53, %v695_v54 }
 0x288   : > { %v597_v55 = vpop.f32.mrf.mxu0 }
 0x289   : > { %v598_v56 = vadd.f32 %v695_v54, %v597_v55  ;;  %615 = vst.msk [vmem:[%s280_s30 + $0x10] sm:$0xff] %vm612_vm1, %v606_v60 }
 0x28a   : > { %v774_v57 = vpop.f32.mrf.mxu0 }
 0x28b   : > { %613 = vst.msk [vmem:[%s280_s30] sm:$0xff] %vm612_vm1, %v598_v56  ;;  %v609_v61 = vadd.f32 %v774_v57, %v695_v54 }
 0x28c   : > { %v600_v58 = vpop.f32.mrf.mxu0 }
 0x28d   : > { %v601_v59 = vadd.f32 %v695_v54, %v600_v58  ;;  %616 = vst.msk [vmem:[%s280_s30 + $0x18] sm:$0xff] %vm612_vm1, %v609_v61 }
 0x28f   : > { %614 = vst.msk [vmem:[%s280_s30 + $0x8] sm:$0xff] %vm612_vm1, %v601_v59 }
 0x290 PF: > { %s17_s24 = sadd.s32 1, %s822_s24  }
 0x291   : > { %p14_p4 = scmp.ge.s32.totalorder %s17_s24, 4  }
 0x293   :  { %16 = sbr.rel (!%p14_p4) target bundleno = 1 (0x1), region = 78 }

</bundles_post_ra>
